<compile_context>
chip_gen: v5e
topology: v5e:2x2
jax: 0.10.0
libtpu: 0.0.40
codegen_flags: <defaults>
</compile_context>

<pallas_src>
import functools

import jax
import jax.numpy as jnp
from jax import lax
from jax.experimental import pallas as pl
from jax.experimental.pallas import tpu as pltpu


# ----------------------------------------------------------------------------
# Fused kernel: global network + saliency combine + TopKAggregator,
# one batch block (B images) per grid step.
# ----------------------------------------------------------------------------
def _fused_global_topk_kernel(patch_ref, wstem_ref, bstem_ref, whead_ref, bhead_ref,
                              cams_ref, sal_ref, topk_ref, *, batch_block, spatial, top_k):
    """Shapes (per grid step), with B = batch_block, S = spatial (= h*w), BS = B*S:
      patch_ref : (1, P, BS)  bf16  im2col'ed 2x2/s2 patches; lanes = (b, s), b-major
      wstem_ref : (Cg, P)     bf16  stem conv weight, transposed
      bstem_ref : (Cg, 1)     f32
      whead_ref : (8, Cg)     bf16  four 1x1 sigmoid heads (2 classes each), transposed
      bhead_ref : (8, 1)      f32
      cams_ref  : (1, 8, BS)  f32   sigmoid CAMs, classes on sublanes, (b,s) lane-dense
      sal_ref   : (1, 2, BS)  f32   saliency_map_global = 0.2*l3 + 0.6*l2 + 0.2*l1
      topk_ref  : (1, B, 8, 1) f32  mean of top-k spatial activations per image/class
    """
    B, S, k = batch_block, spatial, top_k
    patches = patch_ref[0]                                           # (P, BS) bf16

    # Stem conv (2x2, stride 2) as a matmul: bf16 MXU inputs, f32 accumulate, then
    # bias + ReLU in f32 on the VPU (v5e-safe).
    feat = jnp.dot(wstem_ref[...], patches,
                   preferred_element_type=jnp.float32)               # (Cg, BS) f32
    feat = jnp.maximum(feat + bstem_ref[...], 0.0)

    # Four 1x1 sigmoid heads in one matmul; exact sigmoid (exp rides the EUP slot,
    # the f32 divide is exact -- no approx reciprocal feeding y_global).
    logits = jnp.dot(whead_ref[...], feat.astype(jnp.bfloat16),
                     preferred_element_type=jnp.float32) + bhead_ref[...]   # (8, BS) f32
    cams = 1.0 / (1.0 + jnp.exp(-logits))

    # Unmasked lane-dense stores (last dim BS is a multiple of 128 when B*S >= 128).
    cams_ref[0] = cams
    # saliency_map_global: sublane slices (rows 0-1 = l1, 2-3 = l2, 4-5 = l3).
    sal_ref[0] = 0.2 * cams[4:6] + 0.6 * cams[2:4] + 0.2 * cams[0:2]

    # ---- TopKAggregator ------------------------------------------------------
    # Per-image (8, S) views of the lane-flattened CAMs, stacked into one (B, 8, S)
    # slab so a SINGLE k-deep max-extraction chain serves the whole batch block
    # (the serially-dependent XLU chain no longer scales with B).
    # Exact first-occurrence tie handling is kept so the mean matches lax.top_k bit-wise
    # in value-selection terms.  Sentinel -1e30 is activation-agnostic.
    slab = jnp.concatenate(
        [cams[None, :, b * S:(b + 1) * S] for b in range(B)], axis=0)      # (B, 8, S)
    col = lax.broadcasted_iota(jnp.int32, (B, 8, S), 2)

    def body(_, carry):
        xc, acc = carry
        m = jnp.max(xc, axis=-1, keepdims=True)                      # (B, 8, 1)
        first = jnp.min(jnp.where(xc >= m, col, S), axis=-1, keepdims=True)
        xc = jnp.where(col == first, jnp.float32(-1e30), xc)
        return xc, acc + m

    # Unroll only for small static k (at realistic cam sizes k can be large -> keep rolled
    # to bound code size / vreg pressure).
    _, acc = lax.fori_loop(0, k, body,
                           (slab, jnp.zeros((B, 8, 1), jnp.float32)),
                           unroll=(k <= 16))
    topk_ref[0] = acc * (1.0 / k)                                    # (B, 8, 1)


# ----------------------------------------------------------------------------
# Wrapper
# ----------------------------------------------------------------------------
def _pick_batch_block(N, S, P):
    """Pick B so that B*S >= 128 (lane-dense) and per-step blocks stay small.

    Per-image block bytes ~= S * (2*P [bf16 patches in] + 10*4 [f32 cams+sal out]).
    Budget ~8 MiB of live blocks => with double-buffering well under the 32 MiB scoped
    VMEM default (and far under v7x's 64 MiB physical).
    """
    per_image = S * (2 * P + 10 * 4 + 64)
    b = max(1, min(256, (8 * 1024 * 1024) // max(per_image, 1)))
    b = max(b, (128 + S - 1) // S)          # fill at least 128 lanes
    return max(1, min(b, N))


def mil_single_image_forward(x, params, cam_size, top_k, batch_block=None):
    """x: (N, C, H, W) float32 (PyTorch NCHW). Returns (y_global, extras)."""
    N, C, H, W = x.shape
    h, w = cam_size
    S = h * w
    P = 4 * C                                   # 2x2 patch, all channels
    Cg = params["wstem"].shape[1]

    B = _pick_batch_block(N, S, P) if batch_block is None else max(1, min(batch_block, N))
    G = pl.cdiv(N, B)
    Np = G * B
    BS = B * S

    if Np != N:                                 # pad batch to a multiple of B with zeros
        x = jnp.concatenate([x, jnp.zeros((Np - N, C, H, W), x.dtype)], axis=0)

    # im2col + layout transpose + bf16 cast in ONE XLA op:
    #   (Np, C, 2h, 2w) -> (G, P, B*S) with P ordered (dy, dx, c), lanes ordered (b, hh, ww).
    xp = x.reshape(G, B, C, h, 2, w, 2)
    xp = jnp.transpose(xp, (0, 4, 6, 2, 1, 3, 5)).reshape(G, P, BS).astype(jnp.bfloat16)

    # Fold the weight/bias transposes + bf16 casts once (tiny; in a real model these would
    # live pre-transposed / pre-cast).
    wstem_t = params["wstem"].T.astype(jnp.bfloat16)          # (Cg, P)
    bstem_t = params["bstem"].reshape(Cg, 1).astype(jnp.float32)
    whead_t = params["whead"].T.astype(jnp.bfloat16)          # (8, Cg)
    bhead_t = params["bhead"].reshape(8, 1).astype(jnp.float32)

    kernel = functools.partial(_fused_global_topk_kernel,
                               batch_block=B, spatial=S, top_k=top_k)

    cams_f, sal_f, topk = pl.pallas_call(
        kernel,
        out_shape=(jax.ShapeDtypeStruct((G, 8, BS), jnp.float32),
                   jax.ShapeDtypeStruct((G, 2, BS), jnp.float32),
                   jax.ShapeDtypeStruct((G, B, 8, 1), jnp.float32)),
        grid=(G,),
        in_specs=[
            pl.BlockSpec((1, P, BS), lambda g: (g, 0, 0)),
            pl.BlockSpec((Cg, P), lambda g: (0, 0)),
            pl.BlockSpec((Cg, 1), lambda g: (0, 0)),
            pl.BlockSpec((8, Cg), lambda g: (0, 0)),
            pl.BlockSpec((8, 1), lambda g: (0, 0)),
        ],
        out_specs=(pl.BlockSpec((1, 8, BS), lambda g: (g, 0, 0)),
                   pl.BlockSpec((1, 2, BS), lambda g: (g, 0, 0)),
                   pl.BlockSpec((1, B, 8, 1), lambda g: (g, 0, 0, 0))),
        compiler_params=pltpu.CompilerParams(
            dimension_semantics=("parallel",),
            vmem_limit_bytes=32 * 1024 * 1024),
    )(xp, wstem_t, bstem_t, whead_t, bhead_t)

    # Reassemble per-image NCHW views (small XLA reshuffles on the tiny CAM outputs).
    cams = cams_f.reshape(G, 8, B, S).transpose(0, 2, 1, 3).reshape(Np, 8, h, w)[:N]
    sal = sal_f.reshape(G, 2, B, S).transpose(0, 2, 1, 3).reshape(Np, 2, h, w)[:N]
    logits = topk.reshape(Np, 8)[:N].reshape(N, 4, 2)

    y1, y2, y3, y4 = logits[:, 0], logits[:, 1], logits[:, 2], logits[:, 3]
    y_global = (y1 + y2 + y3) / 3.0

    extras = {
        "x_layer1": cams[:, 0:2],
        "x_layer2": cams[:, 2:4],
        "x_layer3": cams[:, 4:6],
        "downsampled_map": cams[:, 6:8],
        "saliency_map_global": sal,
        "y_cam_logits": (y1, y2, y3, y4),
    }
    return y_global, extras


# ----------------------------------------------------------------------------
# Pure-JAX f32 reference (exact module semantics, for correctness check)
# ----------------------------------------------------------------------------
def reference_forward(x, params, cam_size, top_k):
    N, C, H, W = x.shape
    h, w = cam_size
    S = h * w
    # Same (dy, dx, c) patch ordering as the kernel path.
    xp = x.reshape(N, C, h, 2, w, 2)
    xp = jnp.transpose(xp, (0, 2, 4, 3, 5, 1)).reshape(N, S, 4 * C)
    feat = jnp.maximum(jnp.einsum("nsp,pc->nsc", xp, params["wstem"]) + params["bstem"], 0.0)
    cams = jax.nn.sigmoid(jnp.einsum("nsc,ck->nsk", feat, params["whead"]) + params["bhead"])
    sal = 0.2 * cams[..., 4:6] + 0.6 * cams[..., 2:4] + 0.2 * cams[..., 0:2]
    rows = jnp.transpose(cams, (0, 2, 1)).reshape(N * 8, S)
    topv, _ = lax.top_k(rows, top_k)
    logits = topv.mean(-1).reshape(N, 4, 2)
    y_global = (logits[:, 0] + logits[:, 1] + logits[:, 2]) / 3.0
    cams_nchw = jnp.transpose(cams, (0, 2, 1)).reshape(N, 8, h, w)
    sal_nchw = jnp.transpose(sal, (0, 2, 1)).reshape(N, 2, h, w)
    return y_global, logits, sal_nchw, cams_nchw


if __name__ == "__main__":
    # Small, forward-consistent shapes.
    N, C, H, W = 2, 4, 16, 16
    cam_size = (8, 8)
    Cg = 32                                     # global-network hidden width
    top_k_fraction = 0.125
    top_k = max(1, int(round(top_k_fraction * cam_size[0] * cam_size[1])))  # = 8

    key = jax.random.PRNGKey(0)
    kx, k1, k2, k3, k4 = jax.random.split(key, 5)
    x = jax.random.normal(kx, (N, C, H, W), jnp.float32)

    params = {
        "wstem": 0.1 * jax.random.normal(k1, (4 * C, Cg), jnp.float32),
        "bstem": 0.05 * jax.random.normal(k2, (1, Cg), jnp.float32),
        "whead": 0.1 * jax.random.normal(k3, (Cg, 8), jnp.float32),
        "bhead": 0.05 * jax.random.normal(k4, (1, 8), jnp.float32),
    }

    y_global, extras = mil_single_image_forward(x, params, cam_size, top_k)
    jax.block_until_ready(y_global)
    jax.block_until_ready(extras["saliency_map_global"])

    y_ref, logits_ref, sal_ref, cams_ref_nchw = reference_forward(x, params, cam_size, top_k)

    assert y_global.shape == (N, 2)
    assert extras["saliency_map_global"].shape == (N, 2, cam_size[0], cam_size[1])

    # Tolerance 1e-2 covers the bf16 MXU inputs (patches/weights cast to bf16 per the perf
    # feedback); all elementwise math and outputs are f32 and typical observed error is <2e-3.
    tol = dict(atol=1e-2, rtol=1e-2)
    assert jnp.allclose(y_global, y_ref, **tol)
    assert jnp.allclose(jnp.stack(extras["y_cam_logits"], axis=1), logits_ref, **tol)
    assert jnp.allclose(extras["saliency_map_global"], sal_ref, **tol)
    for i, name in enumerate(["x_layer1", "x_layer2", "x_layer3", "downsampled_map"]):
        assert jnp.allclose(extras[name], cams_ref_nchw[:, 2 * i:2 * i + 2], **tol)

    print("KERNEL_OK")
</pallas_src>

<mosaic_0001>
module attributes {stable_mosaic.version = 11 : i64} {
  func.func @_fused_global_topk_kernel(%arg0: i32, %arg1: memref<1x16x128xbf16, #tpu.memory_space<vmem>>, %arg2: memref<32x16xbf16, #tpu.memory_space<vmem>>, %arg3: memref<32x1xf32, #tpu.memory_space<vmem>>, %arg4: memref<8x32xbf16, #tpu.memory_space<vmem>>, %arg5: memref<8x1xf32, #tpu.memory_space<vmem>>, %arg6: memref<1x8x128xf32, #tpu.memory_space<vmem>>, %arg7: memref<1x2x128xf32, #tpu.memory_space<vmem>>, %arg8: memref<1x2x8x1xf32, #tpu.memory_space<vmem>>) attributes {dimension_semantics = [#tpu.dimension_semantics<parallel>], iteration_bounds = array<i64: 1>, scalar_prefetch = 0 : i64, scratch_operands = 0 : i64, tpu.core_type = #tpu.core_type<tc>, window_params = [{transform_indices = @transform_0, window_bounds = array<i64: 1, 16, 128>}, {pipeline_mode = #tpu.pipeline_mode<synchronous>, transform_indices = @transform_1, window_bounds = array<i64: 32, 16>}, {pipeline_mode = #tpu.pipeline_mode<synchronous>, transform_indices = @transform_2, window_bounds = array<i64: 32, 1>}, {pipeline_mode = #tpu.pipeline_mode<synchronous>, transform_indices = @transform_3, window_bounds = array<i64: 8, 32>}, {pipeline_mode = #tpu.pipeline_mode<synchronous>, transform_indices = @transform_4, window_bounds = array<i64: 8, 1>}, {transform_indices = @transform_5, window_bounds = array<i64: 1, 8, 128>}, {transform_indices = @transform_6, window_bounds = array<i64: 1, 2, 128>}, {transform_indices = @transform_7, window_bounds = array<i64: 1, 2, 8, 1>}]} {
    %c0 = arith.constant 0 : index
    %c0_0 = arith.constant 0 : index
    %c0_1 = arith.constant 0 : index
    %0 = vector.load %arg1[%c0, %c0_0, %c0_1] : memref<1x16x128xbf16, #tpu.memory_space<vmem>>, vector<1x16x128xbf16>
    %1 = vector.shape_cast %0 : vector<1x16x128xbf16> to vector<16x128xbf16>
    %c0_2 = arith.constant 0 : index
    %c0_3 = arith.constant 0 : index
    %2 = vector.load %arg2[%c0_2, %c0_3] : memref<32x16xbf16, #tpu.memory_space<vmem>>, vector<32x16xbf16>
    %cst = arith.constant dense<0.000000e+00> : vector<32x128xf32>
    %3 = tpu.matmul %2, %1, %cst {dimension_numbers = #tpu.dot_dimension_numbers<[1], [0], [0], [1], [0, 0, 1, 1], [], []>} : vector<32x16xbf16>, vector<16x128xbf16>, vector<32x128xf32> -> vector<32x128xf32>
    %c0_4 = arith.constant 0 : index
    %c0_5 = arith.constant 0 : index
    %4 = vector.load %arg3[%c0_4, %c0_5] : memref<32x1xf32, #tpu.memory_space<vmem>>, vector<32x1xf32>
    %5 = vector.broadcast %4 : vector<32x1xf32> to vector<32x128xf32>
    %6 = arith.addf %3, %5 : vector<32x128xf32>
    %cst_6 = arith.constant 0.000000e+00 : f32
    %7 = vector.broadcast %cst_6 : f32 to vector<32x128xf32>
    %8 = arith.maximumf %6, %7 : vector<32x128xf32>
    %c0_7 = arith.constant 0 : index
    %c0_8 = arith.constant 0 : index
    %9 = vector.load %arg4[%c0_7, %c0_8] : memref<8x32xbf16, #tpu.memory_space<vmem>>, vector<8x32xbf16>
    %10 = arith.truncf %8 : vector<32x128xf32> to vector<32x128xbf16>
    %cst_9 = arith.constant dense<0.000000e+00> : vector<8x128xf32>
    %11 = tpu.matmul %9, %10, %cst_9 {dimension_numbers = #tpu.dot_dimension_numbers<[1], [0], [0], [1], [0, 0, 1, 1], [], []>} : vector<8x32xbf16>, vector<32x128xbf16>, vector<8x128xf32> -> vector<8x128xf32>
    %c0_10 = arith.constant 0 : index
    %c0_11 = arith.constant 0 : index
    %12 = vector.load %arg5[%c0_10, %c0_11] : memref<8x1xf32, #tpu.memory_space<vmem>>, vector<8x1xf32>
    %13 = vector.broadcast %12 : vector<8x1xf32> to vector<8x128xf32>
    %14 = arith.addf %11, %13 : vector<8x128xf32>
    %cst_12 = arith.constant 0.000000e+00 : f32
    %15 = vector.broadcast %cst_12 : f32 to vector<8x128xf32>
    %16 = arith.subf %15, %14 : vector<8x128xf32>
    %17 = math.exp %16 : vector<8x128xf32>
    %cst_13 = arith.constant 1.000000e+00 : f32
    %18 = vector.broadcast %cst_13 : f32 to vector<8x128xf32>
    %19 = arith.addf %18, %17 : vector<8x128xf32>
    %cst_14 = arith.constant 1.000000e+00 : f32
    %20 = vector.broadcast %cst_14 : f32 to vector<8x128xf32>
    %21 = arith.divf %20, %19 : vector<8x128xf32>
    %c0_15 = arith.constant 0 : index
    %c0_16 = arith.constant 0 : index
    %c0_17 = arith.constant 0 : index
    %22 = vector.load %arg6[%c0_15, %c0_16, %c0_17] : memref<1x8x128xf32, #tpu.memory_space<vmem>>, vector<1x8x128xf32>
    %23 = vector.shape_cast %22 : vector<1x8x128xf32> to vector<8x128xf32>
    %24 = vector.shape_cast %21 : vector<8x128xf32> to vector<1x8x128xf32>
    tpu.vector_store %arg6[%c0_15, %c0_16, %c0_17], %24 {strides = array<i32>} : memref<1x8x128xf32, #tpu.memory_space<vmem>>, vector<1x8x128xf32>,
    %25 = vector.extract_strided_slice %21 {offsets = [4, 0], sizes = [2, 128], strides = [1, 1]} : vector<8x128xf32> to vector<2x128xf32>
    %cst_18 = arith.constant 2.000000e-01 : f32
    %26 = vector.broadcast %cst_18 : f32 to vector<2x128xf32>
    %27 = arith.mulf %26, %25 : vector<2x128xf32>
    %28 = vector.extract_strided_slice %21 {offsets = [2, 0], sizes = [2, 128], strides = [1, 1]} : vector<8x128xf32> to vector<2x128xf32>
    %cst_19 = arith.constant 6.000000e-01 : f32
    %29 = vector.broadcast %cst_19 : f32 to vector<2x128xf32>
    %30 = arith.mulf %29, %28 : vector<2x128xf32>
    %31 = arith.addf %27, %30 : vector<2x128xf32>
    %32 = vector.extract_strided_slice %21 {offsets = [0, 0], sizes = [2, 128], strides = [1, 1]} : vector<8x128xf32> to vector<2x128xf32>
    %cst_20 = arith.constant 2.000000e-01 : f32
    %33 = vector.broadcast %cst_20 : f32 to vector<2x128xf32>
    %34 = arith.mulf %33, %32 : vector<2x128xf32>
    %35 = arith.addf %31, %34 : vector<2x128xf32>
    %c0_21 = arith.constant 0 : index
    %c0_22 = arith.constant 0 : index
    %c0_23 = arith.constant 0 : index
    %36 = vector.load %arg7[%c0_21, %c0_22, %c0_23] : memref<1x2x128xf32, #tpu.memory_space<vmem>>, vector<1x2x128xf32>
    %37 = vector.shape_cast %36 : vector<1x2x128xf32> to vector<2x128xf32>
    %38 = vector.shape_cast %35 : vector<2x128xf32> to vector<1x2x128xf32>
    tpu.vector_store %arg7[%c0_21, %c0_22, %c0_23], %38 {strides = array<i32>} : memref<1x2x128xf32, #tpu.memory_space<vmem>>, vector<1x2x128xf32>,
    %39 = vector.extract_strided_slice %21 {offsets = [0, 0], sizes = [8, 64], strides = [1, 1]} : vector<8x128xf32> to vector<8x64xf32>
    %40 = vector.shape_cast %39 : vector<8x64xf32> to vector<1x8x64xf32>
    %41 = vector.extract_strided_slice %21 {offsets = [0, 64], sizes = [8, 64], strides = [1, 1]} : vector<8x128xf32> to vector<8x64xf32>
    %42 = vector.shape_cast %41 : vector<8x64xf32> to vector<1x8x64xf32>
    %43 = tpu.concatenate %40, %42 in 0 : vector<1x8x64xf32>, vector<1x8x64xf32> -> vector<2x8x64xf32>
    %44 = tpu.iota {dimensions = array<i32: 2>} : vector<2x8x64xi32>
    %cst_24 = arith.constant 0.000000e+00 : f32
    %45 = vector.broadcast %cst_24 : f32 to vector<2x8x1xf32>
    %c0_i32 = arith.constant 0 : i32
    %cst_25 = arith.constant dense<0xFF800000> : vector<2x8xf32>
    %46 = vector.multi_reduction <maximumf>, %43, %cst_25 [2] : vector<2x8x64xf32> to vector<2x8xf32>
    %47 = vector.shape_cast %46 : vector<2x8xf32> to vector<2x8x1xf32>
    %48 = vector.broadcast %47 : vector<2x8x1xf32> to vector<2x8x64xf32>
    %49 = arith.cmpf oge, %43, %48 : vector<2x8x64xf32>
    %c64_i32 = arith.constant 64 : i32
    %50 = vector.broadcast %c64_i32 : i32 to vector<2x8x64xi32>
    %51 = arith.select %49, %44, %50 : vector<2x8x64xi1>, vector<2x8x64xi32>
    %cst_26 = arith.constant dense<2147483647> : vector<2x8xi32>
    %52 = vector.multi_reduction <minsi>, %51, %cst_26 [2] : vector<2x8x64xi32> to vector<2x8xi32>
    %53 = vector.shape_cast %52 : vector<2x8xi32> to vector<2x8x1xi32>
    %54 = vector.broadcast %53 : vector<2x8x1xi32> to vector<2x8x64xi32>
    %55 = arith.cmpi eq, %44, %54 : vector<2x8x64xi32>
    %cst_27 = arith.constant -1.000000e+30 : f32
    %56 = vector.broadcast %cst_27 : f32 to vector<2x8x64xf32>
    %57 = arith.select %55, %56, %43 : vector<2x8x64xi1>, vector<2x8x64xf32>
    %58 = arith.addf %45, %47 : vector<2x8x1xf32>
    %c1_i32 = arith.constant 1 : i32
    %cst_28 = arith.constant dense<0xFF800000> : vector<2x8xf32>
    %59 = vector.multi_reduction <maximumf>, %57, %cst_28 [2] : vector<2x8x64xf32> to vector<2x8xf32>
    %60 = vector.shape_cast %59 : vector<2x8xf32> to vector<2x8x1xf32>
    %61 = vector.broadcast %60 : vector<2x8x1xf32> to vector<2x8x64xf32>
    %62 = arith.cmpf oge, %57, %61 : vector<2x8x64xf32>
    %c64_i32_29 = arith.constant 64 : i32
    %63 = vector.broadcast %c64_i32_29 : i32 to vector<2x8x64xi32>
    %64 = arith.select %62, %44, %63 : vector<2x8x64xi1>, vector<2x8x64xi32>
    %cst_30 = arith.constant dense<2147483647> : vector<2x8xi32>
    %65 = vector.multi_reduction <minsi>, %64, %cst_30 [2] : vector<2x8x64xi32> to vector<2x8xi32>
    %66 = vector.shape_cast %65 : vector<2x8xi32> to vector<2x8x1xi32>
    %67 = vector.broadcast %66 : vector<2x8x1xi32> to vector<2x8x64xi32>
    %68 = arith.cmpi eq, %44, %67 : vector<2x8x64xi32>
    %cst_31 = arith.constant -1.000000e+30 : f32
    %69 = vector.broadcast %cst_31 : f32 to vector<2x8x64xf32>
    %70 = arith.select %68, %69, %57 : vector<2x8x64xi1>, vector<2x8x64xf32>
    %71 = arith.addf %58, %60 : vector<2x8x1xf32>
    %c2_i32 = arith.constant 2 : i32
    %cst_32 = arith.constant dense<0xFF800000> : vector<2x8xf32>
    %72 = vector.multi_reduction <maximumf>, %70, %cst_32 [2] : vector<2x8x64xf32> to vector<2x8xf32>
    %73 = vector.shape_cast %72 : vector<2x8xf32> to vector<2x8x1xf32>
    %74 = vector.broadcast %73 : vector<2x8x1xf32> to vector<2x8x64xf32>
    %75 = arith.cmpf oge, %70, %74 : vector<2x8x64xf32>
    %c64_i32_33 = arith.constant 64 : i32
    %76 = vector.broadcast %c64_i32_33 : i32 to vector<2x8x64xi32>
    %77 = arith.select %75, %44, %76 : vector<2x8x64xi1>, vector<2x8x64xi32>
    %cst_34 = arith.constant dense<2147483647> : vector<2x8xi32>
    %78 = vector.multi_reduction <minsi>, %77, %cst_34 [2] : vector<2x8x64xi32> to vector<2x8xi32>
    %79 = vector.shape_cast %78 : vector<2x8xi32> to vector<2x8x1xi32>
    %80 = vector.broadcast %79 : vector<2x8x1xi32> to vector<2x8x64xi32>
    %81 = arith.cmpi eq, %44, %80 : vector<2x8x64xi32>
    %cst_35 = arith.constant -1.000000e+30 : f32
    %82 = vector.broadcast %cst_35 : f32 to vector<2x8x64xf32>
    %83 = arith.select %81, %82, %70 : vector<2x8x64xi1>, vector<2x8x64xf32>
    %84 = arith.addf %71, %73 : vector<2x8x1xf32>
    %c3_i32 = arith.constant 3 : i32
    %cst_36 = arith.constant dense<0xFF800000> : vector<2x8xf32>
    %85 = vector.multi_reduction <maximumf>, %83, %cst_36 [2] : vector<2x8x64xf32> to vector<2x8xf32>
    %86 = vector.shape_cast %85 : vector<2x8xf32> to vector<2x8x1xf32>
    %87 = vector.broadcast %86 : vector<2x8x1xf32> to vector<2x8x64xf32>
    %88 = arith.cmpf oge, %83, %87 : vector<2x8x64xf32>
    %c64_i32_37 = arith.constant 64 : i32
    %89 = vector.broadcast %c64_i32_37 : i32 to vector<2x8x64xi32>
    %90 = arith.select %88, %44, %89 : vector<2x8x64xi1>, vector<2x8x64xi32>
    %cst_38 = arith.constant dense<2147483647> : vector<2x8xi32>
    %91 = vector.multi_reduction <minsi>, %90, %cst_38 [2] : vector<2x8x64xi32> to vector<2x8xi32>
    %92 = vector.shape_cast %91 : vector<2x8xi32> to vector<2x8x1xi32>
    %93 = vector.broadcast %92 : vector<2x8x1xi32> to vector<2x8x64xi32>
    %94 = arith.cmpi eq, %44, %93 : vector<2x8x64xi32>
    %cst_39 = arith.constant -1.000000e+30 : f32
    %95 = vector.broadcast %cst_39 : f32 to vector<2x8x64xf32>
    %96 = arith.select %94, %95, %83 : vector<2x8x64xi1>, vector<2x8x64xf32>
    %97 = arith.addf %84, %86 : vector<2x8x1xf32>
    %c4_i32 = arith.constant 4 : i32
    %cst_40 = arith.constant dense<0xFF800000> : vector<2x8xf32>
    %98 = vector.multi_reduction <maximumf>, %96, %cst_40 [2] : vector<2x8x64xf32> to vector<2x8xf32>
    %99 = vector.shape_cast %98 : vector<2x8xf32> to vector<2x8x1xf32>
    %100 = vector.broadcast %99 : vector<2x8x1xf32> to vector<2x8x64xf32>
    %101 = arith.cmpf oge, %96, %100 : vector<2x8x64xf32>
    %c64_i32_41 = arith.constant 64 : i32
    %102 = vector.broadcast %c64_i32_41 : i32 to vector<2x8x64xi32>
    %103 = arith.select %101, %44, %102 : vector<2x8x64xi1>, vector<2x8x64xi32>
    %cst_42 = arith.constant dense<2147483647> : vector<2x8xi32>
    %104 = vector.multi_reduction <minsi>, %103, %cst_42 [2] : vector<2x8x64xi32> to vector<2x8xi32>
    %105 = vector.shape_cast %104 : vector<2x8xi32> to vector<2x8x1xi32>
    %106 = vector.broadcast %105 : vector<2x8x1xi32> to vector<2x8x64xi32>
    %107 = arith.cmpi eq, %44, %106 : vector<2x8x64xi32>
    %cst_43 = arith.constant -1.000000e+30 : f32
    %108 = vector.broadcast %cst_43 : f32 to vector<2x8x64xf32>
    %109 = arith.select %107, %108, %96 : vector<2x8x64xi1>, vector<2x8x64xf32>
    %110 = arith.addf %97, %99 : vector<2x8x1xf32>
    %c5_i32 = arith.constant 5 : i32
    %cst_44 = arith.constant dense<0xFF800000> : vector<2x8xf32>
    %111 = vector.multi_reduction <maximumf>, %109, %cst_44 [2] : vector<2x8x64xf32> to vector<2x8xf32>
    %112 = vector.shape_cast %111 : vector<2x8xf32> to vector<2x8x1xf32>
    %113 = vector.broadcast %112 : vector<2x8x1xf32> to vector<2x8x64xf32>
    %114 = arith.cmpf oge, %109, %113 : vector<2x8x64xf32>
    %c64_i32_45 = arith.constant 64 : i32
    %115 = vector.broadcast %c64_i32_45 : i32 to vector<2x8x64xi32>
    %116 = arith.select %114, %44, %115 : vector<2x8x64xi1>, vector<2x8x64xi32>
    %cst_46 = arith.constant dense<2147483647> : vector<2x8xi32>
    %117 = vector.multi_reduction <minsi>, %116, %cst_46 [2] : vector<2x8x64xi32> to vector<2x8xi32>
    %118 = vector.shape_cast %117 : vector<2x8xi32> to vector<2x8x1xi32>
    %119 = vector.broadcast %118 : vector<2x8x1xi32> to vector<2x8x64xi32>
    %120 = arith.cmpi eq, %44, %119 : vector<2x8x64xi32>
    %cst_47 = arith.constant -1.000000e+30 : f32
    %121 = vector.broadcast %cst_47 : f32 to vector<2x8x64xf32>
    %122 = arith.select %120, %121, %109 : vector<2x8x64xi1>, vector<2x8x64xf32>
    %123 = arith.addf %110, %112 : vector<2x8x1xf32>
    %c6_i32 = arith.constant 6 : i32
    %cst_48 = arith.constant dense<0xFF800000> : vector<2x8xf32>
    %124 = vector.multi_reduction <maximumf>, %122, %cst_48 [2] : vector<2x8x64xf32> to vector<2x8xf32>
    %125 = vector.shape_cast %124 : vector<2x8xf32> to vector<2x8x1xf32>
    %126 = vector.broadcast %125 : vector<2x8x1xf32> to vector<2x8x64xf32>
    %127 = arith.cmpf oge, %122, %126 : vector<2x8x64xf32>
    %c64_i32_49 = arith.constant 64 : i32
    %128 = vector.broadcast %c64_i32_49 : i32 to vector<2x8x64xi32>
    %129 = arith.select %127, %44, %128 : vector<2x8x64xi1>, vector<2x8x64xi32>
    %cst_50 = arith.constant dense<2147483647> : vector<2x8xi32>
    %130 = vector.multi_reduction <minsi>, %129, %cst_50 [2] : vector<2x8x64xi32> to vector<2x8xi32>
    %131 = vector.shape_cast %130 : vector<2x8xi32> to vector<2x8x1xi32>
    %132 = vector.broadcast %131 : vector<2x8x1xi32> to vector<2x8x64xi32>
    %133 = arith.cmpi eq, %44, %132 : vector<2x8x64xi32>
    %cst_51 = arith.constant -1.000000e+30 : f32
    %134 = vector.broadcast %cst_51 : f32 to vector<2x8x64xf32>
    %135 = arith.select %133, %134, %122 : vector<2x8x64xi1>, vector<2x8x64xf32>
    %136 = arith.addf %123, %125 : vector<2x8x1xf32>
    %c7_i32 = arith.constant 7 : i32
    %cst_52 = arith.constant dense<0xFF800000> : vector<2x8xf32>
    %137 = vector.multi_reduction <maximumf>, %135, %cst_52 [2] : vector<2x8x64xf32> to vector<2x8xf32>
    %138 = vector.shape_cast %137 : vector<2x8xf32> to vector<2x8x1xf32>
    %139 = vector.broadcast %138 : vector<2x8x1xf32> to vector<2x8x64xf32>
    %140 = arith.cmpf oge, %135, %139 : vector<2x8x64xf32>
    %c64_i32_53 = arith.constant 64 : i32
    %141 = vector.broadcast %c64_i32_53 : i32 to vector<2x8x64xi32>
    %142 = arith.select %140, %44, %141 : vector<2x8x64xi1>, vector<2x8x64xi32>
    %cst_54 = arith.constant dense<2147483647> : vector<2x8xi32>
    %143 = vector.multi_reduction <minsi>, %142, %cst_54 [2] : vector<2x8x64xi32> to vector<2x8xi32>
    %144 = vector.shape_cast %143 : vector<2x8xi32> to vector<2x8x1xi32>
    %145 = vector.broadcast %144 : vector<2x8x1xi32> to vector<2x8x64xi32>
    %146 = arith.cmpi eq, %44, %145 : vector<2x8x64xi32>
    %cst_55 = arith.constant -1.000000e+30 : f32
    %147 = vector.broadcast %cst_55 : f32 to vector<2x8x64xf32>
    %148 = arith.select %146, %147, %135 : vector<2x8x64xi1>, vector<2x8x64xf32>
    %149 = arith.addf %136, %138 : vector<2x8x1xf32>
    %cst_56 = arith.constant 1.250000e-01 : f32
    %150 = vector.broadcast %cst_56 : f32 to vector<2x8x1xf32>
    %151 = arith.mulf %149, %150 : vector<2x8x1xf32>
    %c0_57 = arith.constant 0 : index
    %c0_58 = arith.constant 0 : index
    %c0_59 = arith.constant 0 : index
    %c0_60 = arith.constant 0 : index
    %152 = vector.load %arg8[%c0_57, %c0_58, %c0_59, %c0_60] : memref<1x2x8x1xf32, #tpu.memory_space<vmem>>, vector<1x2x8x1xf32>
    %153 = vector.shape_cast %152 : vector<1x2x8x1xf32> to vector<2x8x1xf32>
    %154 = vector.shape_cast %151 : vector<2x8x1xf32> to vector<1x2x8x1xf32>
    tpu.vector_store %arg8[%c0_57, %c0_58, %c0_59, %c0_60], %154 {strides = array<i32>} : memref<1x2x8x1xf32, #tpu.memory_space<vmem>>, vector<1x2x8x1xf32>,
    return
  }
  func.func @transform_0(%arg0: i32) -> (i32, i32, i32) {
    %c0_i32 = arith.constant 0 : i32
    %c0_i32_0 = arith.constant 0 : i32
    %c0_i32_1 = arith.constant 0 : i32
    return %arg0, %c0_i32, %c0_i32_0 : i32, i32, i32
  }
  func.func @transform_1(%arg0: i32) -> (i32, i32) {
    %c0_i32 = arith.constant 0 : i32
    %c0_i32_0 = arith.constant 0 : i32
    %c0_i32_1 = arith.constant 0 : i32
    return %c0_i32, %c0_i32_0 : i32, i32
  }
  func.func @transform_2(%arg0: i32) -> (i32, i32) {
    %c0_i32 = arith.constant 0 : i32
    %c0_i32_0 = arith.constant 0 : i32
    %c0_i32_1 = arith.constant 0 : i32
    return %c0_i32, %c0_i32_0 : i32, i32
  }
  func.func @transform_3(%arg0: i32) -> (i32, i32) {
    %c0_i32 = arith.constant 0 : i32
    %c0_i32_0 = arith.constant 0 : i32
    %c0_i32_1 = arith.constant 0 : i32
    return %c0_i32, %c0_i32_0 : i32, i32
  }
  func.func @transform_4(%arg0: i32) -> (i32, i32) {
    %c0_i32 = arith.constant 0 : i32
    %c0_i32_0 = arith.constant 0 : i32
    %c0_i32_1 = arith.constant 0 : i32
    return %c0_i32, %c0_i32_0 : i32, i32
  }
  func.func @transform_5(%arg0: i32) -> (i32, i32, i32) {
    %c0_i32 = arith.constant 0 : i32
    %c0_i32_0 = arith.constant 0 : i32
    %c0_i32_1 = arith.constant 0 : i32
    return %arg0, %c0_i32, %c0_i32_0 : i32, i32, i32
  }
  func.func @transform_6(%arg0: i32) -> (i32, i32, i32) {
    %c0_i32 = arith.constant 0 : i32
    %c0_i32_0 = arith.constant 0 : i32
    %c0_i32_1 = arith.constant 0 : i32
    return %arg0, %c0_i32, %c0_i32_0 : i32, i32, i32
  }
  func.func @transform_7(%arg0: i32) -> (i32, i32, i32, i32) {
    %c0_i32 = arith.constant 0 : i32
    %c0_i32_0 = arith.constant 0 : i32
    %c0_i32_1 = arith.constant 0 : i32
    %c0_i32_2 = arith.constant 0 : i32
    return %arg0, %c0_i32, %c0_i32_0, %c0_i32_1 : i32, i32, i32, i32
  }
}

</mosaic_0001>

<bundles_post_ra>
// kernel: tpu_custom_call.1
= control target key start
LH: loop header
LB: loop body
LE: loop exit
PB: predicated region body
PF: predicated region fallthrough
CT: control target
= control target key end

     0   :  { %13 = vsyncpa [#allocation3], 0  ;;  %v619_v3 = vmov 0   ;;  %vm72_vm0 = vcmask 130048   ;;  %s814_s0 = inlined_call_operand.vmem [shape: bf16[1,16,128], index: 0, kind: input, shape index: {}]   ;;  %s815_s1 = inlined_call_operand.vmem [shape: bf16[32,16], index: 1, kind: input, shape index: {}]   ;;  %s816_s2 = inlined_call_operand.vmem [shape: f32[32,1], index: 2, kind: input, shape index: {}]   ;;  %s817_s3 = inlined_call_operand.vmem [shape: bf16[8,32], index: 3, kind: input, shape index: {}]   ;;  %s818_s4 = inlined_call_operand.vmem [shape: f32[8,1], index: 4, kind: input, shape index: {}]   ;;  %s819_s5 = inlined_call_operand.hbm [shape: f32[1,8,128], index: 5, kind: output, shape index: {0}]   ;;  %s820_s6 = inlined_call_operand.hbm [shape: f32[1,2,128], index: 6, kind: output, shape index: {1}]   ;;  %s821_s7 = inlined_call_operand.vmem [shape: f32[1,2,8,1], index: 7, kind: output, shape index: {2}]  }
   0x1   :  { %v552_v0 = vld [vmem:[%s814_s0] sm:$0xff]  ;;  %v554_v1 = vld [vmem:[%s815_s1 + $0x8] sm:$0xff]  ;;  %560 = vset.pattern.permute.xlu0 %v619_v3  ;;  %v34_v4 = vld [vmem:[%s816_s2 + $0x10] sm:$0xff]  ;;  %561 = vset.pattern.permute.xlu1 %v619_v3 }
   0x2   :  { %v553_v2 = vld [vmem:[%s815_s1] sm:$0xff]  ;;  %555 = vmatpush.bf16.msra.mxu2 %v552_v0  ;;  %86 = vmatpush.bf16.msra.mxu0 %v552_v0 }
   0x3   :  { %v32_v5 = vld [vmem:[%s816_s2] sm:$0xff] }
   0x4   :  { %14 = vsyncpa [#allocation5], 0  ;;  %48 = vperm.xlu0 %560, %v34_v4   ;;  %38 = vperm.xlu1 %561, %v32_v5   ;;  %v35_v6 = vld [vmem:[%s816_s2 + $0x18] sm:$0xff]  ;;  %v33_v7 = vld [vmem:[%s816_s2 + $0x8] sm:$0xff]  ;;  %vm111_vm1 = vcmask 261120   ;;  %vm165_vm5 = vcmask 523264   ;;  %v163_v55 = vlaneseq }
   0x5   :  { %562 = vset.pattern.permute.xlu2 %v619_v3  ;;  %550 = vmatmul.msk.bf16.vlgmr.msra.gmra.mxu2 %vm72_vm0, %v554_v1  ;;  %v105_v8 = vld [vmem:[%s818_s4] sm:$0xff]  ;;  %s621_s15 = smov [#allocation2]   ;;  %s508_s19 = sshll.u32 %s819_s5, 4  ;;  %s509_s19 = int_to_ptr.hbm [resolvable:$true] %s508_s19 }
   0x6   :  { %549 = vmatmul.msk.bf16.vlgmr.msra.gmra.mxu0 %vm72_vm0, %v553_v2  ;;  %108 = vperm.xlu2 %562, %v105_v8   ;;  %v102_v27 = vld [vmem:[%s817_s3] sm:$0xf]  ;;  %s620_s3 = smov 64   ;;  %v692_v56 = vand.u32 127, %v163_v55  ;;  %s506_s16 = sshll.u32 %s621_s15, 4  ;;  %s507_s16 = int_to_ptr.vmem [resolvable:$true] %s506_s16 }
   0x7   :  { %s622_s20 = smov [#allocation4]   ;;  %s519_s24 = sshll.u32 %s820_s6, 4  ;;  %s520_s24 = int_to_ptr.hbm [resolvable:$true] %s519_s24 }
   0x8   :  { %s517_s21 = sshll.u32 %s622_s20, 4  ;;  %s518_s21 = int_to_ptr.vmem [resolvable:$true] %s517_s21 }
   0xc   :  { %53 = vperm.xlu0 %560, %v35_v6   ;;  %43 = vperm.xlu1 %561, %v33_v7  }
  0x60   :  { %v109_v28 = vpop.permute.xlu2 %108 }
  0x76   :  { %v39_v9 = vpop.permute.xlu1 %38  ;;  %v49_v11 = vpop.permute.xlu0 %48 }
  0x7e   :  { %v44_v13 = vpop.permute.xlu1 %43  ;;  %v54_v16 = vpop.permute.xlu0 %53 }
  0x83   :  { %v88_v10 = vpop.f32.mrf.mxu0 }
  0x84   :  { %v89_v18 = vadd.f32 %v88_v10, %v39_v9 }
  0x86   :  { %v98_v23 = vmax.f32 %v89_v18, 0.0 }
  0x88   :  { %v93_v12 = vpop.f32.mrf.mxu2 }
  0x89   :  { %v94_v15 = vadd.f32 %v93_v12, %v49_v11 }
  0x8b   :  { %v90_v14 = vpop.f32.mrf.mxu0  ;;  %v100_v21 = vmax.f32 %v94_v15, 0.0 }
  0x8c   :  { %v91_v19 = vadd.f32 %v90_v14, %v44_v13 }
  0x8e   :  { %v99_v24 = vmax.f32 %v91_v19, 0.0 }
  0x90   :  { %v95_v17 = vpop.f32.mrf.mxu2  ;;  %v103_v26 = vpack.c.bf16 %v99_v24, %v98_v23 }
  0x91   :  { %v96_v20 = vadd.f32 %v95_v17, %v54_v16 }
  0x93   :  { %v101_v22 = vmax.f32 %v96_v20, 0.0 }
  0x95   :  { %v104_v25 = vpack.c.bf16 %v101_v22, %v100_v21 }
  0x97   :  { %121 = vmatpush.bf16.msra.mxu1 %v104_v25 }
  0x9b   :  { %122 = vmatpush.bf16.msra.mxu1 %v103_v26 }
  0x9e   :  { %551 = vmatmul.msk.bf16.vlgmr.msra.gmra.mxu1 %vm111_vm1, %v102_v27 }
 0x11b   :  { %v124_v29 = vpop.f32.mrf.mxu1 }
 0x11c   :  { %v125_v30 = vadd.f32 %v124_v29, %v109_v28 }
 0x11e   :  { %v128_v31 = vsub.f32 0.0, %v125_v30 }
 0x120   :  { %v129_v32 = vmul.f32 1.442695, %v128_v31 }
 0x122   :  { %563 = vpow2.f32 %v129_v32 }
 0x123   :  { %v126_v33 = vpop.f32.mrf.mxu1 }
 0x128   :  { %v564_v34 = vpop.eup %563 }
 0x129   :  { %v131_v35 = vadd.f32 1.0, %v564_v34 }
 0x12b   :  { %565 = vrcp.f32 %v131_v35  ;;  %v143_v39 = vand.u32 2147483648, %v131_v35  ;;  %v141_v41 = vand.u32 2147483647, %v131_v35  ;;  %vm137_vm3 = vweird.f32 %v131_v35 }
 0x12d   :  { %v144_v43 = vor.u32 1.1754944e-38, %v143_v39  ;;  %vm142_vm6 = vcmp.eq.f32.partialorder %v141_v41, 8.507059e+37 }
 0x131   :  { %v566_v36 = vpop.eup %565 }
 0x132   :  { %v133_v37 = vmul.f32 %v566_v36, %v131_v35  ;;  %vm138_vm2 = vweird.f32 %v566_v36 }
 0x133   :  { %vm139_vm4 = vmor %vm137_vm3, %vm138_vm2 }
 0x134   :  { %v134_v38 = vsub.f32 1.0, %v133_v37 }
 0x136   :  { %v135_v40 = vmul.f32 %v566_v36, %v134_v38 }
 0x138   :  { %v136_v42 = vadd.f32 %v566_v36, %v135_v40 }
 0x13a   :  { %v140_v44 = vsel %vm139_vm4, %v566_v36, %v136_v42 }
 0x13b   :  { %v145_v45 = vsel %vm142_vm6, %v144_v43, %v140_v44 }
 0x13c   :  { %160 = vrot.lane.b32.xlu2 %v145_v45, %s620_s3  ;;  %147 = vst [vmem:[#allocation2] sm:$0xff] %v145_v45  ;;  %v166_v46 = vsel %vm165_vm5, %v145_v45, -inf  ;;  %v148_v47 = vmul.f32 0.2, %v145_v45  ;;  %v149_v48 = vmul.f32 0.6, %v145_v45 }
 0x13d   :  { %167 = vmax.xlane.f32.xlu0 %v166_v46  ;;  %511 = dma.vmem_to_hbm [thread:$0]  %s507_s16, 128, %s509_s19, [#allocation3]  }
 0x13e   :  { %v151_v49 = vrot.slane %v149_v48, 6  ;;  %v155_v51 = vrot.slane %v148_v47, 4 }
 0x140   :  { %v153_v50 = vadd.f32 %v151_v49, %v148_v47 }
 0x142   :  { %v157_v52 = vadd.f32 %v155_v51, %v153_v50 }
 0x144   :  { %158 = vst [vmem:[#allocation4 - $0x4] sm:$0x30] %v157_v52 }
 0x145   :  { %522 = dma.vmem_to_hbm [thread:$0]  %s518_s21, 32, %s520_s24, [#allocation5]  }
 0x196   :  { %v161_v53 = vpop.permute.xlu2 %160 }
 0x197   :  { %v169_v54 = vsel %vm165_vm5, %v161_v53, -inf }
 0x198   :  { %170 = vmax.xlane.f32.xlu1 %v169_v54 }
 0x1b0   :  { %v694_v57 = vpop.xlane.xlu0 %167 }
 0x1b1   :  { %vm172_vm7 = vcmp.ge.f32.partialorder %v145_v45, %v694_v57 }
 0x1b2   :  { %v174_v58 = vsel %vm172_vm7, %v692_v56, 64 }
 0x1b3   :  { %v176_v59 = vsel %vm165_vm5, %v174_v58, 2147483647 }
 0x1b4   :  { %v178_v60 = vshra.s32 %v176_v59, 16  ;;  %v177_v3 = vand.u32 65535, %v176_v59 }
 0x1b6   :  { %v180_v61 = vcvt.s32.f32 %v178_v60  ;;  %v179_v5 = vcvt.s32.f32 %v177_v3 }
 0x1b8   :  { %181 = vmin.xlane.f32.xlu2 %v180_v61 }
 0x20b   :  { %v699_v62 = vpop.xlane.xlu1 %170 }
 0x20c   :  { %vm173_vm8 = vcmp.ge.f32.partialorder %v161_v53, %v699_v62 }
 0x20d   :  { %v175_v63 = vsel %vm173_vm8, %v692_v56, 64 }
 0x20e   :  { %v191_v0 = vsel %vm165_vm5, %v175_v63, 2147483647 }
 0x20f   :  { %v193_v1 = vshra.s32 %v191_v0, 16  ;;  %v192_v7 = vand.u32 65535, %v191_v0 }
 0x211   :  { %v195_v2 = vcvt.s32.f32 %v193_v1  ;;  %v194_v9 = vcvt.s32.f32 %v192_v7 }
 0x213   :  { %196 = vmin.xlane.f32.xlu2 %v195_v2 }
 0x22b   :  { %v182_v4 = vpop.xlane.xlu2 %181 }
 0x22c   :  { %vm183_vm9 = vcmp.eq.f32.partialorder %v180_v61, %v182_v4  ;;  %v188_v11 = vcvt.f32.s32 %v182_v4 }
 0x22d   :  { %v184_v6 = vsel %vm183_vm9, %v179_v5, inf }
 0x22e   :  { %185 = vmin.xlane.f32.xlu0 %v184_v6  ;;  %v189_v13 = vshll.u32 %v188_v11, 16 }
 0x286   :  { %v197_v8 = vpop.xlane.xlu2 %196 }
 0x287   :  { %vm198_vm10 = vcmp.eq.f32.partialorder %v195_v2, %v197_v8  ;;  %v203_v18 = vcvt.f32.s32 %v197_v8 }
 0x288   :  { %v199_v10 = vsel %vm198_vm10, %v194_v9, inf }
 0x289   :  { %200 = vmin.xlane.f32.xlu1 %v199_v10  ;;  %v204_v20 = vshll.u32 %v203_v18, 16 }
 0x2a1   :  { %v186_v12 = vpop.xlane.xlu0 %185 }
 0x2a2   :  { %v187_v14 = vcvt.f32.s32 %v186_v12 }
 0x2a4   :  { %v190_v15 = vadd.s32 %v189_v13, %v187_v14 }
 0x2a6   :  { %vm206_vm11 = vcmp.eq.s32.totalorder %v692_v56, %v190_v15 }
 0x2a7   :  { %v208_v16 = vsel %vm206_vm11, -1e+30, %v145_v45 }
 0x2a8   :  { %v212_v17 = vsel %vm165_vm5, %v208_v16, -inf }
 0x2a9   :  { %213 = vmax.xlane.f32.xlu2 %v212_v17 }
 0x2fc   :  { %v201_v19 = vpop.xlane.xlu1 %200 }
 0x2fd   :  { %v202_v21 = vcvt.f32.s32 %v201_v19 }
 0x2ff   :  { %v205_v22 = vadd.s32 %v204_v20, %v202_v21 }
 0x301   :  { %vm207_vm12 = vcmp.eq.s32.totalorder %v692_v56, %v205_v22 }
 0x302   :  { %v209_v23 = vsel %vm207_vm12, -1e+30, %v161_v53 }
 0x303   :  { %v215_v24 = vsel %vm165_vm5, %v209_v23, -inf }
 0x304   :  { %216 = vmax.xlane.f32.xlu0 %v215_v24 }
 0x31c   :  { %v708_v25 = vpop.xlane.xlu2 %213 }
 0x31d   :  { %vm218_vm13 = vcmp.ge.f32.partialorder %v208_v16, %v708_v25 }
 0x31e   :  { %v220_v26 = vsel %vm218_vm13, %v692_v56, 64 }
 0x31f   :  { %v222_v27 = vsel %vm165_vm5, %v220_v26, 2147483647 }
 0x320   :  { %v224_v28 = vshra.s32 %v222_v27, 16  ;;  %v223_v35 = vand.u32 65535, %v222_v27 }
 0x322   :  { %v226_v29 = vcvt.s32.f32 %v224_v28  ;;  %v225_v37 = vcvt.s32.f32 %v223_v35 }
 0x324   :  { %227 = vmin.xlane.f32.xlu1 %v226_v29 }
 0x377   :  { %v713_v30 = vpop.xlane.xlu0 %216 }
 0x378   :  { %vm219_vm14 = vcmp.ge.f32.partialorder %v209_v23, %v713_v30 }
 0x379   :  { %v221_v31 = vsel %vm219_vm14, %v692_v56, 64 }
 0x37a   :  { %v237_v32 = vsel %vm165_vm5, %v221_v31, 2147483647 }
 0x37b   :  { %v239_v33 = vshra.s32 %v237_v32, 16  ;;  %v238_v39 = vand.u32 65535, %v237_v32 }
 0x37d   :  { %v241_v34 = vcvt.s32.f32 %v239_v33  ;;  %v240_v41 = vcvt.s32.f32 %v238_v39 }
 0x37f   :  { %242 = vmin.xlane.f32.xlu2 %v241_v34 }
 0x397   :  { %v228_v36 = vpop.xlane.xlu1 %227 }
 0x398   :  { %vm229_vm15 = vcmp.eq.f32.partialorder %v226_v29, %v228_v36  ;;  %v234_v43 = vcvt.f32.s32 %v228_v36 }
 0x399   :  { %v230_v38 = vsel %vm229_vm15, %v225_v37, inf }
 0x39a   :  { %231 = vmin.xlane.f32.xlu0 %v230_v38  ;;  %v235_v45 = vshll.u32 %v234_v43, 16 }
 0x3f2   :  { %v243_v40 = vpop.xlane.xlu2 %242 }
 0x3f3   :  { %vm244_vm0 = vcmp.eq.f32.partialorder %v241_v34, %v243_v40  ;;  %v249_v50 = vcvt.f32.s32 %v243_v40 }
 0x3f4   :  { %v245_v42 = vsel %vm244_vm0, %v240_v41, inf }
 0x3f5   :  { %246 = vmin.xlane.f32.xlu1 %v245_v42  ;;  %v250_v52 = vshll.u32 %v249_v50, 16 }
 0x40d   :  { %v232_v44 = vpop.xlane.xlu0 %231 }
 0x40e   :  { %v233_v46 = vcvt.f32.s32 %v232_v44 }
 0x410   :  { %v236_v47 = vadd.s32 %v235_v45, %v233_v46 }
 0x412   :  { %vm252_vm1 = vcmp.eq.s32.totalorder %v692_v56, %v236_v47 }
 0x413   :  { %v254_v48 = vsel %vm252_vm1, -1e+30, %v208_v16 }
 0x414   :  { %v258_v49 = vsel %vm165_vm5, %v254_v48, -inf }
 0x415   :  { %259 = vmax.xlane.f32.xlu2 %v258_v49 }
 0x468   :  { %v247_v51 = vpop.xlane.xlu1 %246 }
 0x469   :  { %v248_v53 = vcvt.f32.s32 %v247_v51 }
 0x46b   :  { %v251_v54 = vadd.s32 %v250_v52, %v248_v53 }
 0x46d   :  { %vm253_vm2 = vcmp.eq.s32.totalorder %v692_v56, %v251_v54 }
 0x46e   :  { %v255_v55 = vsel %vm253_vm2, -1e+30, %v209_v23 }
 0x46f   :  { %v261_v58 = vsel %vm165_vm5, %v255_v55, -inf }
 0x470   :  { %262 = vmax.xlane.f32.xlu0 %v261_v58 }
 0x488   :  { %v722_v59 = vpop.xlane.xlu2 %259 }
 0x489   :  { %vm264_vm3 = vcmp.ge.f32.partialorder %v254_v48, %v722_v59 }
 0x48a   :  { %v266_v60 = vsel %vm264_vm3, %v692_v56, 64 }
 0x48b   :  { %v268_v61 = vsel %vm165_vm5, %v266_v60, 2147483647 }
 0x48c   :  { %v270_v63 = vshra.s32 %v268_v61, 16  ;;  %v269_v6 = vand.u32 65535, %v268_v61 }
 0x48e   :  { %v272_v0 = vcvt.s32.f32 %v270_v63  ;;  %v271_v8 = vcvt.s32.f32 %v269_v6 }
 0x490   :  { %273 = vmin.xlane.f32.xlu1 %v272_v0 }
 0x4e3   :  { %v727_v1 = vpop.xlane.xlu0 %262 }
 0x4e4   :  { %vm265_vm4 = vcmp.ge.f32.partialorder %v255_v55, %v727_v1 }
 0x4e5   :  { %v267_v2 = vsel %vm265_vm4, %v692_v56, 64 }
 0x4e6   :  { %v283_v3 = vsel %vm165_vm5, %v267_v2, 2147483647 }
 0x4e7   :  { %v285_v4 = vshra.s32 %v283_v3, 16  ;;  %v284_v10 = vand.u32 65535, %v283_v3 }
 0x4e9   :  { %v287_v5 = vcvt.s32.f32 %v285_v4  ;;  %v286_v12 = vcvt.s32.f32 %v284_v10 }
 0x4eb   :  { %288 = vmin.xlane.f32.xlu2 %v287_v5 }
 0x503   :  { %v274_v7 = vpop.xlane.xlu1 %273 }
 0x504   :  { %vm275_vm6 = vcmp.eq.f32.partialorder %v272_v0, %v274_v7  ;;  %v280_v14 = vcvt.f32.s32 %v274_v7 }
 0x505   :  { %v276_v9 = vsel %vm275_vm6, %v271_v8, inf }
 0x506   :  { %277 = vmin.xlane.f32.xlu0 %v276_v9  ;;  %v281_v16 = vshll.u32 %v280_v14, 16 }
 0x55e   :  { %v289_v11 = vpop.xlane.xlu2 %288 }
 0x55f   :  { %vm290_vm7 = vcmp.eq.f32.partialorder %v287_v5, %v289_v11  ;;  %v295_v21 = vcvt.f32.s32 %v289_v11 }
 0x560   :  { %v291_v13 = vsel %vm290_vm7, %v286_v12, inf }
 0x561   :  { %292 = vmin.xlane.f32.xlu1 %v291_v13  ;;  %v296_v23 = vshll.u32 %v295_v21, 16 }
 0x579   :  { %v278_v15 = vpop.xlane.xlu0 %277 }
 0x57a   :  { %v279_v17 = vcvt.f32.s32 %v278_v15 }
 0x57c   :  { %v282_v18 = vadd.s32 %v281_v16, %v279_v17 }
 0x57e   :  { %vm298_vm8 = vcmp.eq.s32.totalorder %v692_v56, %v282_v18 }
 0x57f   :  { %v300_v19 = vsel %vm298_vm8, -1e+30, %v254_v48 }
 0x580   :  { %v304_v20 = vsel %vm165_vm5, %v300_v19, -inf }
 0x581   :  { %305 = vmax.xlane.f32.xlu2 %v304_v20 }
 0x5d4   :  { %v293_v22 = vpop.xlane.xlu1 %292 }
 0x5d5   :  { %v294_v24 = vcvt.f32.s32 %v293_v22 }
 0x5d7   :  { %v297_v26 = vadd.s32 %v296_v23, %v294_v24 }
 0x5d9   :  { %vm299_vm9 = vcmp.eq.s32.totalorder %v692_v56, %v297_v26 }
 0x5da   :  { %v301_v27 = vsel %vm299_vm9, -1e+30, %v255_v55 }
 0x5db   :  { %v307_v28 = vsel %vm165_vm5, %v301_v27, -inf }
 0x5dc   :  { %308 = vmax.xlane.f32.xlu0 %v307_v28 }
 0x5f4   :  { %v736_v29 = vpop.xlane.xlu2 %305 }
 0x5f5   :  { %vm310_vm10 = vcmp.ge.f32.partialorder %v300_v19, %v736_v29 }
 0x5f6   :  { %v312_v31 = vsel %vm310_vm10, %v692_v56, 64 }
 0x5f7   :  { %v314_v32 = vsel %vm165_vm5, %v312_v31, 2147483647 }
 0x5f8   :  { %v316_v33 = vshra.s32 %v314_v32, 16  ;;  %v315_v40 = vand.u32 65535, %v314_v32 }
 0x5fa   :  { %v318_v34 = vcvt.s32.f32 %v316_v33  ;;  %v317_v42 = vcvt.s32.f32 %v315_v40 }
 0x5fc   :  { %319 = vmin.xlane.f32.xlu1 %v318_v34 }
 0x64f   :  { %v741_v35 = vpop.xlane.xlu0 %308 }
 0x650   :  { %vm311_vm11 = vcmp.ge.f32.partialorder %v301_v27, %v741_v35 }
 0x651   :  { %v313_v36 = vsel %vm311_vm11, %v692_v56, 64 }
 0x652   :  { %v329_v37 = vsel %vm165_vm5, %v313_v36, 2147483647 }
 0x653   :  { %v331_v38 = vshra.s32 %v329_v37, 16  ;;  %v330_v44 = vand.u32 65535, %v329_v37 }
 0x655   :  { %v333_v39 = vcvt.s32.f32 %v331_v38  ;;  %v332_v46 = vcvt.s32.f32 %v330_v44 }
 0x657   :  { %334 = vmin.xlane.f32.xlu2 %v333_v39 }
 0x66f   :  { %v320_v41 = vpop.xlane.xlu1 %319 }
 0x670   :  { %vm321_vm12 = vcmp.eq.f32.partialorder %v318_v34, %v320_v41  ;;  %v326_v48 = vcvt.f32.s32 %v320_v41 }
 0x671   :  { %v322_v43 = vsel %vm321_vm12, %v317_v42, inf }
 0x672   :  { %323 = vmin.xlane.f32.xlu0 %v322_v43  ;;  %v327_v50 = vshll.u32 %v326_v48, 16 }
 0x6ca   :  { %v335_v45 = vpop.xlane.xlu2 %334 }
 0x6cb   :  { %vm336_vm13 = vcmp.eq.f32.partialorder %v333_v39, %v335_v45  ;;  %v341_v55 = vcvt.f32.s32 %v335_v45 }
 0x6cc   :  { %v337_v47 = vsel %vm336_vm13, %v332_v46, inf }
 0x6cd   :  { %338 = vmin.xlane.f32.xlu1 %v337_v47  ;;  %v342_v60 = vshll.u32 %v341_v55, 16 }
 0x6e5   :  { %v324_v49 = vpop.xlane.xlu0 %323 }
 0x6e6   :  { %v325_v51 = vcvt.f32.s32 %v324_v49 }
 0x6e8   :  { %v328_v52 = vadd.s32 %v327_v50, %v325_v51 }
 0x6ea   :  { %vm344_vm14 = vcmp.eq.s32.totalorder %v692_v56, %v328_v52 }
 0x6eb   :  { %v346_v53 = vsel %vm344_vm14, -1e+30, %v300_v19 }
 0x6ec   :  { %v350_v54 = vsel %vm165_vm5, %v346_v53, -inf }
 0x6ed   :  { %351 = vmax.xlane.f32.xlu2 %v350_v54 }
 0x740   :  { %v339_v58 = vpop.xlane.xlu1 %338 }
 0x741   :  { %v340_v61 = vcvt.f32.s32 %v339_v58 }
 0x743   :  { %v343_v63 = vadd.s32 %v342_v60, %v340_v61 }
 0x745   :  { %vm345_vm15 = vcmp.eq.s32.totalorder %v692_v56, %v343_v63 }
 0x746   :  { %v347_v0 = vsel %vm345_vm15, -1e+30, %v301_v27 }
 0x747   :  { %v353_v2 = vsel %vm165_vm5, %v347_v0, -inf }
 0x748   :  { %354 = vmax.xlane.f32.xlu0 %v353_v2 }
 0x760   :  { %v750_v3 = vpop.xlane.xlu2 %351 }
 0x761   :  { %vm356_vm0 = vcmp.ge.f32.partialorder %v346_v53, %v750_v3 }
 0x762   :  { %v358_v4 = vsel %vm356_vm0, %v692_v56, 64 }
 0x763   :  { %v360_v5 = vsel %vm165_vm5, %v358_v4, 2147483647 }
 0x764   :  { %v362_v6 = vshra.s32 %v360_v5, 16  ;;  %v361_v13 = vand.u32 65535, %v360_v5 }
 0x766   :  { %v364_v7 = vcvt.s32.f32 %v362_v6  ;;  %v363_v15 = vcvt.s32.f32 %v361_v13 }
 0x768   :  { %365 = vmin.xlane.f32.xlu1 %v364_v7 }
 0x7bb   :  { %v755_v8 = vpop.xlane.xlu0 %354 }
 0x7bc   :  { %vm357_vm1 = vcmp.ge.f32.partialorder %v347_v0, %v755_v8 }
 0x7bd   :  { %v359_v9 = vsel %vm357_vm1, %v692_v56, 64 }
 0x7be   :  { %v375_v10 = vsel %vm165_vm5, %v359_v9, 2147483647 }
 0x7bf   :  { %v377_v11 = vshra.s32 %v375_v10, 16  ;;  %v376_v17 = vand.u32 65535, %v375_v10 }
 0x7c1   :  { %v379_v12 = vcvt.s32.f32 %v377_v11  ;;  %v378_v19 = vcvt.s32.f32 %v376_v17 }
 0x7c3   :  { %380 = vmin.xlane.f32.xlu2 %v379_v12 }
 0x7db   :  { %v366_v14 = vpop.xlane.xlu1 %365 }
 0x7dc   :  { %vm367_vm2 = vcmp.eq.f32.partialorder %v364_v7, %v366_v14  ;;  %v372_v21 = vcvt.f32.s32 %v366_v14 }
 0x7dd   :  { %v368_v16 = vsel %vm367_vm2, %v363_v15, inf }
 0x7de   :  { %369 = vmin.xlane.f32.xlu0 %v368_v16  ;;  %v373_v23 = vshll.u32 %v372_v21, 16 }
 0x836   :  { %v381_v18 = vpop.xlane.xlu2 %380 }
 0x837   :  { %vm382_vm3 = vcmp.eq.f32.partialorder %v379_v12, %v381_v18  ;;  %v387_v31 = vcvt.f32.s32 %v381_v18 }
 0x838   :  { %v383_v20 = vsel %vm382_vm3, %v378_v19, inf  ;;  %vm498_vm3 = vcmask 7168  }
 0x839   :  { %384 = vmin.xlane.f32.xlu1 %v383_v20  ;;  %v388_v33 = vshll.u32 %v387_v31, 16 }
 0x851   :  { %v370_v22 = vpop.xlane.xlu0 %369 }
 0x852   :  { %v371_v24 = vcvt.f32.s32 %v370_v22 }
 0x854   :  { %v374_v26 = vadd.s32 %v373_v23, %v371_v24 }
 0x856   :  { %vm390_vm4 = vcmp.eq.s32.totalorder %v692_v56, %v374_v26 }
 0x857   :  { %v392_v27 = vsel %vm390_vm4, -1e+30, %v346_v53 }
 0x858   :  { %v396_v28 = vsel %vm165_vm5, %v392_v27, -inf }
 0x859   :  { %397 = vmax.xlane.f32.xlu2 %v396_v28 }
 0x8ac   :  { %v385_v32 = vpop.xlane.xlu1 %384 }
 0x8ad   :  { %v386_v34 = vcvt.f32.s32 %v385_v32 }
 0x8af   :  { %v389_v36 = vadd.s32 %v388_v33, %v386_v34 }
 0x8b1   :  { %vm391_vm6 = vcmp.eq.s32.totalorder %v692_v56, %v389_v36 }
 0x8b2   :  { %v393_v37 = vsel %vm391_vm6, -1e+30, %v347_v0 }
 0x8b3   :  { %v399_v38 = vsel %vm165_vm5, %v393_v37, -inf }
 0x8b4   :  { %400 = vmax.xlane.f32.xlu0 %v399_v38 }
 0x8cc   :  { %v764_v39 = vpop.xlane.xlu2 %397 }
 0x8cd   :  { %vm402_vm7 = vcmp.ge.f32.partialorder %v392_v27, %v764_v39 }
 0x8ce   :  { %v404_v40 = vsel %vm402_vm7, %v692_v56, 64 }
 0x8cf   :  { %v406_v41 = vsel %vm165_vm5, %v404_v40, 2147483647 }
 0x8d0   :  { %v408_v42 = vshra.s32 %v406_v41, 16  ;;  %v407_v49 = vand.u32 65535, %v406_v41 }
 0x8d2   :  { %v410_v43 = vcvt.s32.f32 %v408_v42  ;;  %v409_v51 = vcvt.s32.f32 %v407_v49 }
 0x8d4   :  { %411 = vmin.xlane.f32.xlu1 %v410_v43 }
 0x927   :  { %v769_v44 = vpop.xlane.xlu0 %400 }
 0x928   :  { %vm403_vm8 = vcmp.ge.f32.partialorder %v393_v37, %v769_v44 }
 0x929   :  { %v405_v45 = vsel %vm403_vm8, %v692_v56, 64 }
 0x92a   :  { %v421_v46 = vsel %vm165_vm5, %v405_v45, 2147483647 }
 0x92b   :  { %v423_v47 = vshra.s32 %v421_v46, 16  ;;  %v422_v53 = vand.u32 65535, %v421_v46 }
 0x92d   :  { %v425_v48 = vcvt.s32.f32 %v423_v47  ;;  %v424_v55 = vcvt.s32.f32 %v422_v53 }
 0x92f   :  { %426 = vmin.xlane.f32.xlu2 %v425_v48 }
 0x947   :  { %v412_v50 = vpop.xlane.xlu1 %411 }
 0x948   :  { %vm413_vm9 = vcmp.eq.f32.partialorder %v410_v43, %v412_v50  ;;  %v418_v60 = vcvt.f32.s32 %v412_v50 }
 0x949   :  { %v414_v52 = vsel %vm413_vm9, %v409_v51, inf }
 0x94a   :  { %415 = vmin.xlane.f32.xlu0 %v414_v52  ;;  %v419_v63 = vshll.u32 %v418_v60, 16  ;;  %v256_v52 = vadd.f32 %v708_v25, %v694_v57  ;;  %v257_v57 = vadd.f32 %v713_v30, %v699_v62 }
 0x94c   :  { %v302_v53 = vadd.f32 %v722_v59, %v256_v52  ;;  %v303_v25 = vadd.f32 %v727_v1, %v257_v57 }
 0x94e   :  { %v349_v59 = vadd.f32 %v741_v35, %v303_v25 }
 0x9a2   :  { %v427_v54 = vpop.xlane.xlu2 %426 }
 0x9a3   :  { %vm428_vm10 = vcmp.eq.f32.partialorder %v425_v48, %v427_v54  ;;  %v433_v6 = vcvt.f32.s32 %v427_v54  ;;  %v348_v54 = vadd.f32 %v736_v29, %v302_v53  ;;  %v395_v29 = vadd.f32 %v755_v8, %v349_v59 }
 0x9a4   :  { %v429_v58 = vsel %vm428_vm10, %v424_v55, inf }
 0x9a5   :  { %430 = vmin.xlane.f32.xlu1 %v429_v58  ;;  %v434_v9 = vshll.u32 %v433_v6, 16  ;;  %v394_v55 = vadd.f32 %v750_v3, %v348_v54  ;;  %v441_v3 = vadd.f32 %v769_v44, %v395_v29 }
 0x9a7   :  { %v440_v58 = vadd.f32 %v764_v39, %v394_v55 }
 0x9bd   :  { %v416_v61 = vpop.xlane.xlu0 %415 }
 0x9be   :  { %v417_v0 = vcvt.f32.s32 %v416_v61 }
 0x9c0   :  { %v420_v2 = vadd.s32 %v419_v63, %v417_v0 }
 0x9c2   :  { %vm436_vm11 = vcmp.eq.s32.totalorder %v692_v56, %v420_v2 }
 0x9c3   :  { %v438_v4 = vsel %vm436_vm11, -1e+30, %v392_v27 }
 0x9c4   :  { %v442_v5 = vsel %vm165_vm5, %v438_v4, -inf }
 0x9c5   :  { %443 = vmax.xlane.f32.xlu2 %v442_v5 }
 0xa18   :  { %v431_v7 = vpop.xlane.xlu1 %430 }
 0xa19   :  { %v432_v10 = vcvt.f32.s32 %v431_v7 }
 0xa1b   :  { %v435_v11 = vadd.s32 %v434_v9, %v432_v10 }
 0xa1d   :  { %vm437_vm12 = vcmp.eq.s32.totalorder %v692_v56, %v435_v11 }
 0xa1e   :  { %v439_v12 = vsel %vm437_vm12, -1e+30, %v393_v37 }
 0xa1f   :  { %v445_v13 = vsel %vm165_vm5, %v439_v12, -inf }
 0xa20   :  { %446 = vmax.xlane.f32.xlu0 %v445_v13 }
 0xa38   :  { %v444_v14 = vpop.xlane.xlu2 %443 }
 0xa39   :  { %vm448_vm13 = vcmp.ge.f32.partialorder %v438_v4, %v444_v14  ;;  %v486_v60 = vadd.f32 %v444_v14, %v440_v58 }
 0xa3a   :  { %v450_v15 = vsel %vm448_vm13, %v692_v56, 64 }
 0xa3b   :  { %v452_v16 = vsel %vm165_vm5, %v450_v15, 2147483647 }
 0xa3c   :  { %v454_v17 = vshra.s32 %v452_v16, 16  ;;  %v453_v24 = vand.u32 65535, %v452_v16 }
 0xa3e   :  { %v456_v18 = vcvt.s32.f32 %v454_v17  ;;  %v455_v27 = vcvt.s32.f32 %v453_v24 }
 0xa40   :  { %457 = vmin.xlane.f32.xlu1 %v456_v18 }
 0xa93   :  { %v780_v19 = vpop.xlane.xlu0 %446 }
 0xa94   :  { %vm449_vm14 = vcmp.ge.f32.partialorder %v439_v12, %v780_v19  ;;  %v487_v39 = vadd.f32 %v780_v19, %v441_v3 }
 0xa95   :  { %v451_v20 = vsel %vm449_vm14, %v692_v56, 64 }
 0xa96   :  { %v467_v21 = vsel %vm165_vm5, %v451_v20, 2147483647 }
 0xa97   :  { %v469_v22 = vshra.s32 %v467_v21, 16  ;;  %v468_v31 = vand.u32 65535, %v467_v21 }
 0xa99   :  { %v471_v23 = vcvt.s32.f32 %v469_v22  ;;  %v470_v33 = vcvt.s32.f32 %v468_v31 }
 0xa9b   :  { %472 = vmin.xlane.f32.xlu2 %v471_v23 }
 0xab3   :  { %v458_v26 = vpop.xlane.xlu1 %457 }
 0xab4   :  { %vm459_vm15 = vcmp.eq.f32.partialorder %v456_v18, %v458_v26  ;;  %v464_v36 = vcvt.f32.s32 %v458_v26 }
 0xab5   :  { %v460_v28 = vsel %vm459_vm15, %v455_v27, inf }
 0xab6   :  { %461 = vmin.xlane.f32.xlu0 %v460_v28  ;;  %v465_v38 = vshll.u32 %v464_v36, 16 }
 0xb0e   :  { %v473_v32 = vpop.xlane.xlu2 %472 }
 0xb0f   :  { %vm474_vm0 = vcmp.eq.f32.partialorder %v471_v23, %v473_v32  ;;  %v479_v45 = vcvt.f32.s32 %v473_v32 }
 0xb10   :  { %v475_v34 = vsel %vm474_vm0, %v470_v33, inf }
 0xb11   :  { %476 = vmin.xlane.f32.xlu1 %v475_v34  ;;  %v480_v47 = vshll.u32 %v479_v45, 16 }
 0xb29   :  { %v462_v37 = vpop.xlane.xlu0 %461 }
 0xb2a   :  { %v463_v40 = vcvt.f32.s32 %v462_v37 }
 0xb2c   :  { %v466_v41 = vadd.s32 %v465_v38, %v463_v40 }
 0xb2e   :  { %vm482_vm1 = vcmp.eq.s32.totalorder %v692_v56, %v466_v41 }
 0xb2f   :  { %v484_v42 = vsel %vm482_vm1, -1e+30, %v438_v4 }
 0xb30   :  { %v488_v43 = vsel %vm165_vm5, %v484_v42, -inf }
 0xb31   :  { %489 = vmax.xlane.f32.xlu2 %v488_v43 }
 0xb84   :  { %v477_v46 = vpop.xlane.xlu1 %476 }
 0xb85   :  { %v478_v48 = vcvt.f32.s32 %v477_v46 }
 0xb87   :  { %v481_v49 = vadd.s32 %v480_v47, %v478_v48 }
 0xb89   :  { %vm483_vm2 = vcmp.eq.s32.totalorder %v692_v56, %v481_v49 }
 0xb8a   :  { %v485_v50 = vsel %vm483_vm2, -1e+30, %v439_v12 }
 0xb8b   :  { %v491_v51 = vsel %vm165_vm5, %v485_v50, -inf }
 0xb8c   :  { %492 = vmax.xlane.f32.xlu0 %v491_v51 }
 0xba4   :  { %v490_v61 = vpop.xlane.xlu2 %489 }
 0xba5   :  { %v494_v63 = vadd.f32 %v490_v61, %v486_v60 }
 0xba7   :  { %v496_v56 = vmul.f32 0.125, %v494_v63 }
 0xba9   :  { %499 = vst.msk [vmem:[%s821_s7] sm:$0xff] %vm498_vm3, %v496_v56 }
 0xbff   :  { %v493_v0 = vpop.xlane.xlu0 %492 }
 0xc00   :  { %v495_v2 = vadd.f32 %v493_v0, %v487_v39 }
 0xc02   :  { %v497_v4 = vmul.f32 0.125, %v495_v2 }
 0xc04   :  { %500 = vst.msk [vmem:[%s821_s7 + $0x8] sm:$0xff] %vm498_vm3, %v497_v4 }
 0xc05   :  { %615 = dma.done.wait [#allocation3], 128  }
 0xc06   :  { %616 = vsyncadd [#allocation3], 4294967168 }
 0xc07   :  { %617 = dma.done.wait [#allocation5], 32  }
 0xc08   :  { %618 = vsyncadd [#allocation5], 4294967264 }
 0xc09   :  { %535 = vsyncpa [#allocation3], 1 }
 0xc0a   :  { %536 = vsyncpa [#allocation5], 1 }

</bundles_post_ra>
